<compile_context>
chip_gen: v7x
topology: tpu7x:2x2x1
jax: 0.10.0
libtpu: 0.0.40
codegen_flags: <defaults>
</compile_context>

<pallas_src>
import functools

import jax
import jax.numpy as jnp
from jax import lax
from jax.experimental import pallas as pl
from jax.experimental.pallas import tpu as pltpu


def _lpg_kernel(e_wt_ref, e_wtu_ref, pe_ref, out_ref, *, r):
    f32 = jnp.float32
    e_wt = e_wt_ref[...]
    wr = e_wt.shape[1]

    # Plane-equation channels for this (batch, H-tile) block, each (TH, W).
    # Sliced individually: no channel-stack reshape, no relayout hazard.
    n1 = pe_ref[0, 0].astype(f32)
    n2 = pe_ref[0, 1].astype(f32)
    n3 = pe_ref[0, 2].astype(f32)
    n4 = pe_ref[0, 3].astype(f32)

    # Lane-direction (W) expansion on the MXU, at 1/r of output resolution.
    # u is folded into e_wtu, so b1 = (n1 * u) already W-expanded.
    b1 = jnp.dot(n1, e_wtu_ref[...], preferred_element_type=f32)   # (TH, Wr)
    a2 = jnp.dot(n2, e_wt, preferred_element_type=f32)             # (TH, Wr)
    a3 = jnp.dot(n3, e_wt, preferred_element_type=f32)             # (TH, Wr)
    a4 = jnp.dot(n4, e_wt, preferred_element_type=f32)             # (TH, Wr)
    base = b1 + a3                                                 # n1*u + n3

    # v over the r sub-rows; a single vreg-sized constant per grid step.
    p_idx = lax.broadcasted_iota(jnp.int32, (r, wr), 0).astype(f32)
    v = (p_idx - (r - 1) * 0.5) * (1.0 / r)                        # (r, Wr)

    # Sublane-direction (H) expansion via broadcast + FMA on the VPU
    # (hidden under the output DMA), instead of full-resolution MXU passes.
    denom = base[:, None, :] + a2[:, None, :] * v[None, :, :]      # (TH, r, Wr)

    # EUP approximate reciprocal + one Newton refinement (~1e-7 rel error).
    recip = pl.reciprocal(denom, approx=True)
    recip = recip * (2.0 - denom * recip)

    out_ref[0] = (a4[:, None, :] * recip).astype(out_ref.dtype)


def _vmem_budget():
    """Generation-aware scoped-VMEM limit (bytes)."""
    try:
        cap = int(pltpu.get_tpu_info().vmem_capacity_bytes)
    except Exception:
        cap = 64 * 1024 * 1024  # conservative (v7x-sized) fallback
    return min(int(cap * 0.6), 100 * 1024 * 1024)


def _choose_tile_h(B, H, W, r, budget_bytes, out_bytes,
                   out_block_cap=4 * 1024 * 1024):
    """Largest H-tile (multiple of 8, or H itself) whose modeled per-step VMEM
    footprint fits the budget.  The model counts double-buffered input/output
    pipeline buffers, the (double-buffered) constant expansion matrices, the
    full-resolution temporaries and the (TH, Wr) intermediates.  TH is capped
    once the output block reaches ~4 MiB, and shrunk when possible so the grid
    has at least two steps (keeps both TensorCores busy on megacore parts)."""
    Wr = W * r
    r_pad = -(-r // 8) * 8  # sublane padding of the (r, Wr) tiles in VMEM

    def footprint(th):
        full = th * r_pad * Wr                       # one full-res slab (elems)
        out_blk = 2 * full * out_bytes               # double-buffered output block
        temps = 3 * full * 4                         # live full-res f32 temporaries
        inp = 2 * 4 * th * W * 4                     # double-buffered plane_eq block
        consts = 2 * 2 * W * Wr * 4                  # e_wt / e_wtu (x2 pipeline bufs)
        small = 6 * th * Wr * 4                      # (TH, Wr) intermediates
        return out_blk + temps + inp + consts + small

    cands = sorted({d for d in range(8, H + 1, 8) if H % d == 0} | {H})
    fits = [d for d in cands
            if footprint(d) <= budget_bytes
            and d * r * Wr * out_bytes <= out_block_cap]
    th = max(fits) if fits else min(cands)

    if B * (H // th) < 2:  # give the second TensorCore (v7x) some work
        smaller = [d for d in (fits if fits else cands) if d < th]
        if smaller:
            th = max(smaller)
    return th


def local_planar_guidance(plane_eq, focal=None, *, upratio, out_dtype=jnp.float32):
    """Pallas port of the BTS/Depthformer local_planar_guidance forward.

    plane_eq: [B, 4, H, W].  `focal` is accepted but unused (matches the
    PyTorch forward).  Returns depth of shape [B, H*upratio, W*upratio] in
    `out_dtype` (pass jnp.bfloat16 to halve the HBM writeback, the roofline
    for this op, if the consumer tolerates bf16)."""
    del focal  # unused by the reference forward pass
    B, C, H, W = plane_eq.shape
    assert C == 4, "plane_eq must have 4 channels (n1..n4)"
    r = int(upratio)
    Wr = W * r
    f32 = jnp.float32

    vmem_limit = _vmem_budget()
    out_bytes = jnp.dtype(out_dtype).itemsize
    TH = _choose_tile_h(B, H, W, r, budget_bytes=vmem_limit // 2,
                        out_bytes=out_bytes)

    # W-direction expansion matrices (selector, and u-weighted selector),
    # built once and kept VMEM-resident via constant index_maps.
    jj = jnp.arange(Wr, dtype=jnp.int32)
    u = ((jj % r).astype(f32) - (r - 1) * 0.5) / r
    e_wt = (jnp.arange(W, dtype=jnp.int32)[:, None] == (jj // r)[None, :]).astype(f32)  # (W, Wr)
    e_wtu = e_wt * u[None, :]                                                           # (W, Wr)

    kernel = functools.partial(_lpg_kernel, r=r)
    const_map = lambda b, i: (0, 0)

    out4 = pl.pallas_call(
        kernel,
        out_shape=jax.ShapeDtypeStruct((B, H, r, Wr), out_dtype),
        grid=(B, H // TH),
        in_specs=[
            pl.BlockSpec((W, Wr), const_map),                        # e_wt
            pl.BlockSpec((W, Wr), const_map),                        # e_wtu (u folded in)
            pl.BlockSpec((1, 4, TH, W), lambda b, i: (b, 0, i, 0)),  # plane_eq tile
        ],
        out_specs=pl.BlockSpec((1, TH, r, Wr), lambda b, i: (b, i, 0, 0)),
        compiler_params=pltpu.CompilerParams(
            dimension_semantics=("parallel", "parallel"),
            vmem_limit_bytes=vmem_limit,
        ),
    )(e_wt, e_wtu, plane_eq)

    # (B, H, r, Wr) -> (B, H*r, Wr): contiguous merge of adjacent row dims,
    # free in XLA (no transpose involved).
    return out4.reshape(B, H * r, Wr)


def _reference(plane_eq, upratio):
    """Pure-JAX port of the PyTorch forward, for validation."""
    r = int(upratio)
    B, _, H, W = plane_eq.shape
    pe = jnp.repeat(plane_eq, r, axis=2)
    pe = jnp.repeat(pe, r, axis=3)
    n1, n2, n3, n4 = pe[:, 0], pe[:, 1], pe[:, 2], pe[:, 3]
    rf = float(r)
    u = jnp.tile(jnp.arange(r, dtype=jnp.float32).reshape(1, 1, r), (B, H * r, W))
    u = (u - (rf - 1.0) * 0.5) / rf
    v = jnp.tile(jnp.arange(r, dtype=jnp.float32).reshape(1, r, 1), (B, H, W * r))
    v = (v - (rf - 1.0) * 0.5) / rf
    return n4 / (n1 * u + n2 * v + n3)


if __name__ == "__main__":
    key = jax.random.PRNGKey(0)
    B, C, H, W = 2, 4, 16, 16
    upratio = 8  # -> output (2, 128, 128); Wr = 128 keeps the output store lane-dense

    k1, k2, k3, k4 = jax.random.split(key, 4)
    # Keep the denominator bounded away from zero (n3 >= 1, small n1/n2),
    # mirroring realistic normalized plane equations.
    n12 = 0.1 * jax.random.normal(k1, (B, 2, H, W), dtype=jnp.float32)
    n3 = 1.0 + jnp.abs(jax.random.normal(k2, (B, 1, H, W), dtype=jnp.float32))
    n4 = jax.random.uniform(k3, (B, 1, H, W), dtype=jnp.float32, minval=0.1, maxval=10.0)
    plane_eq = jnp.concatenate([n12, n3, n4], axis=1)  # [B, 4, H, W]
    focal = jax.random.uniform(k4, (B,), dtype=jnp.float32)  # unused, as in PyTorch

    out = jax.block_until_ready(local_planar_guidance(plane_eq, focal, upratio=upratio))

    ref = _reference(plane_eq, upratio)
    assert out.shape == (B, H * upratio, W * upratio), out.shape
    assert jnp.allclose(out, ref, rtol=1e-4, atol=1e-5), float(jnp.max(jnp.abs(out - ref)))

    print("KERNEL_OK")
</pallas_src>

<mosaic_0001>
module attributes {stable_mosaic.version = 11 : i64} {
  func.func @_lpg_kernel(%arg0: i32, %arg1: i32, %arg2: memref<16x128xf32, #tpu.memory_space<vmem>>, %arg3: memref<16x128xf32, #tpu.memory_space<vmem>>, %arg4: memref<1x4x16x16xf32, #tpu.memory_space<vmem>>, %arg5: memref<1x16x8x128xf32, #tpu.memory_space<vmem>>) attributes {dimension_semantics = [#tpu.dimension_semantics<parallel>, #tpu.dimension_semantics<parallel>], iteration_bounds = array<i64: 2, 1>, scalar_prefetch = 0 : i64, scratch_operands = 0 : i64, tpu.core_type = #tpu.core_type<tc>, window_params = [{pipeline_mode = #tpu.pipeline_mode<synchronous>, transform_indices = @transform_0, window_bounds = array<i64: 16, 128>}, {pipeline_mode = #tpu.pipeline_mode<synchronous>, transform_indices = @transform_1, window_bounds = array<i64: 16, 128>}, {transform_indices = @transform_2, window_bounds = array<i64: 1, 4, 16, 16>}, {transform_indices = @transform_3, window_bounds = array<i64: 1, 16, 8, 128>}]} {
    %c0 = arith.constant 0 : index
    %c0_0 = arith.constant 0 : index
    %0 = vector.load %arg2[%c0, %c0_0] : memref<16x128xf32, #tpu.memory_space<vmem>>, vector<16x128xf32>
    %c0_1 = arith.constant 0 : index
    %c0_2 = arith.constant 0 : index
    %c0_3 = arith.constant 0 : index
    %c0_4 = arith.constant 0 : index
    %1 = vector.load %arg4[%c0_1, %c0_2, %c0_3, %c0_4] : memref<1x4x16x16xf32, #tpu.memory_space<vmem>>, vector<1x1x16x16xf32>
    %2 = vector.shape_cast %1 : vector<1x1x16x16xf32> to vector<16x16xf32>
    %c0_5 = arith.constant 0 : index
    %c1 = arith.constant 1 : index
    %c0_6 = arith.constant 0 : index
    %c0_7 = arith.constant 0 : index
    %3 = vector.load %arg4[%c0_5, %c1, %c0_6, %c0_7] : memref<1x4x16x16xf32, #tpu.memory_space<vmem>>, vector<1x1x16x16xf32>
    %4 = vector.shape_cast %3 : vector<1x1x16x16xf32> to vector<16x16xf32>
    %c0_8 = arith.constant 0 : index
    %c2 = arith.constant 2 : index
    %c0_9 = arith.constant 0 : index
    %c0_10 = arith.constant 0 : index
    %5 = vector.load %arg4[%c0_8, %c2, %c0_9, %c0_10] : memref<1x4x16x16xf32, #tpu.memory_space<vmem>>, vector<1x1x16x16xf32>
    %6 = vector.shape_cast %5 : vector<1x1x16x16xf32> to vector<16x16xf32>
    %c0_11 = arith.constant 0 : index
    %c3 = arith.constant 3 : index
    %c0_12 = arith.constant 0 : index
    %c0_13 = arith.constant 0 : index
    %7 = vector.load %arg4[%c0_11, %c3, %c0_12, %c0_13] : memref<1x4x16x16xf32, #tpu.memory_space<vmem>>, vector<1x1x16x16xf32>
    %8 = vector.shape_cast %7 : vector<1x1x16x16xf32> to vector<16x16xf32>
    %c0_14 = arith.constant 0 : index
    %c0_15 = arith.constant 0 : index
    %9 = vector.load %arg3[%c0_14, %c0_15] : memref<16x128xf32, #tpu.memory_space<vmem>>, vector<16x128xf32>
    %cst = arith.constant dense<0.000000e+00> : vector<16x128xf32>
    %10 = tpu.matmul %2, %9, %cst {dimension_numbers = #tpu.dot_dimension_numbers<[1], [0], [0], [1], [0, 0, 1, 1], [], []>} : vector<16x16xf32>, vector<16x128xf32>, vector<16x128xf32> -> vector<16x128xf32>
    %cst_16 = arith.constant dense<0.000000e+00> : vector<16x128xf32>
    %11 = tpu.matmul %4, %0, %cst_16 {dimension_numbers = #tpu.dot_dimension_numbers<[1], [0], [0], [1], [0, 0, 1, 1], [], []>} : vector<16x16xf32>, vector<16x128xf32>, vector<16x128xf32> -> vector<16x128xf32>
    %cst_17 = arith.constant dense<0.000000e+00> : vector<16x128xf32>
    %12 = tpu.matmul %6, %0, %cst_17 {dimension_numbers = #tpu.dot_dimension_numbers<[1], [0], [0], [1], [0, 0, 1, 1], [], []>} : vector<16x16xf32>, vector<16x128xf32>, vector<16x128xf32> -> vector<16x128xf32>
    %cst_18 = arith.constant dense<0.000000e+00> : vector<16x128xf32>
    %13 = tpu.matmul %8, %0, %cst_18 {dimension_numbers = #tpu.dot_dimension_numbers<[1], [0], [0], [1], [0, 0, 1, 1], [], []>} : vector<16x16xf32>, vector<16x128xf32>, vector<16x128xf32> -> vector<16x128xf32>
    %14 = arith.addf %10, %12 : vector<16x128xf32>
    %15 = tpu.iota {dimensions = array<i32: 0>} : vector<8x128xi32>
    %16 = arith.sitofp %15 : vector<8x128xi32> to vector<8x128xf32>
    %cst_19 = arith.constant 3.500000e+00 : f32
    %17 = vector.broadcast %cst_19 : f32 to vector<8x128xf32>
    %18 = arith.subf %16, %17 : vector<8x128xf32>
    %cst_20 = arith.constant 1.250000e-01 : f32
    %19 = vector.broadcast %cst_20 : f32 to vector<8x128xf32>
    %20 = arith.mulf %18, %19 : vector<8x128xf32>
    %21 = vector.shape_cast %14 : vector<16x128xf32> to vector<16x1x128xf32>
    %22 = vector.shape_cast %11 : vector<16x128xf32> to vector<16x1x128xf32>
    %23 = vector.shape_cast %20 : vector<8x128xf32> to vector<1x8x128xf32>
    %24 = vector.broadcast %22 : vector<16x1x128xf32> to vector<16x8x128xf32>
    %25 = vector.broadcast %23 : vector<1x8x128xf32> to vector<16x8x128xf32>
    %26 = arith.mulf %24, %25 : vector<16x8x128xf32>
    %27 = vector.broadcast %21 : vector<16x1x128xf32> to vector<16x8x128xf32>
    %28 = arith.addf %27, %26 : vector<16x8x128xf32>
    %29 = tpu.reciprocal %28 {approx = true} : vector<16x8x128xf32> -> vector<16x8x128xf32>
    %30 = arith.mulf %28, %29 : vector<16x8x128xf32>
    %cst_21 = arith.constant 2.000000e+00 : f32
    %31 = vector.broadcast %cst_21 : f32 to vector<16x8x128xf32>
    %32 = arith.subf %31, %30 : vector<16x8x128xf32>
    %33 = arith.mulf %29, %32 : vector<16x8x128xf32>
    %34 = vector.shape_cast %13 : vector<16x128xf32> to vector<16x1x128xf32>
    %35 = vector.broadcast %34 : vector<16x1x128xf32> to vector<16x8x128xf32>
    %36 = arith.mulf %35, %33 : vector<16x8x128xf32>
    %c0_22 = arith.constant 0 : index
    %c0_23 = arith.constant 0 : index
    %c0_24 = arith.constant 0 : index
    %c0_25 = arith.constant 0 : index
    %37 = vector.load %arg5[%c0_22, %c0_23, %c0_24, %c0_25] : memref<1x16x8x128xf32, #tpu.memory_space<vmem>>, vector<1x16x8x128xf32>
    %38 = vector.shape_cast %37 : vector<1x16x8x128xf32> to vector<16x8x128xf32>
    %39 = vector.shape_cast %36 : vector<16x8x128xf32> to vector<1x16x8x128xf32>
    tpu.vector_store %arg5[%c0_22, %c0_23, %c0_24, %c0_25], %39 {strides = array<i32>} : memref<1x16x8x128xf32, #tpu.memory_space<vmem>>, vector<1x16x8x128xf32>,
    return
  }
  func.func @transform_0(%arg0: i32, %arg1: i32) -> (i32, i32) {
    %c0_i32 = arith.constant 0 : i32
    %c0_i32_0 = arith.constant 0 : i32
    %c0_i32_1 = arith.constant 0 : i32
    return %c0_i32, %c0_i32_0 : i32, i32
  }
  func.func @transform_1(%arg0: i32, %arg1: i32) -> (i32, i32) {
    %c0_i32 = arith.constant 0 : i32
    %c0_i32_0 = arith.constant 0 : i32
    %c0_i32_1 = arith.constant 0 : i32
    return %c0_i32, %c0_i32_0 : i32, i32
  }
  func.func @transform_2(%arg0: i32, %arg1: i32) -> (i32, i32, i32, i32) {
    %c0_i32 = arith.constant 0 : i32
    %c0_i32_0 = arith.constant 0 : i32
    %c0_i32_1 = arith.constant 0 : i32
    return %arg0, %c0_i32, %arg1, %c0_i32_0 : i32, i32, i32, i32
  }
  func.func @transform_3(%arg0: i32, %arg1: i32) -> (i32, i32, i32, i32) {
    %c0_i32 = arith.constant 0 : i32
    %c0_i32_0 = arith.constant 0 : i32
    %c0_i32_1 = arith.constant 0 : i32
    return %arg0, %arg1, %c0_i32, %c0_i32_0 : i32, i32, i32, i32
  }
}

</mosaic_0001>

<bundles_post_ra>
// kernel: tpu_custom_call.1
= control target key start
LH: loop header
LB: loop body
LE: loop exit
PB: predicated region body
PF: predicated region fallthrough
CT: control target
= control target key end

     0   :  { %8 = vsyncpa [#allocation3], 0  ;;  %s2326_s0 = inlined_call_operand.hbm [shape: f32[16,128], index: 0, kind: input, shape index: {}]   ;;  %s2327_s1 = inlined_call_operand.hbm [shape: f32[16,128], index: 1, kind: input, shape index: {}]   ;;  %s2328_s2 = inlined_call_operand.hbm [shape: f32[2,4,16,16], index: 2, kind: input, shape index: {}]   ;;  %s2329_s3 = inlined_call_operand.hbm [shape: f32[2,16,8,128], index: 3, kind: output, shape index: {}]  }
   0x1   :  { %9 = vsyncpa [#allocation6], 0 }
   0x2   :  { %10 = vsyncpa [#allocation4], 0 }
   0x3   :  { %12 = vsyncpa [#allocation4 + $0x1], 0  ;;  %s1796_s12 = smov 0   ;;  %s1798_s13 = smov 0  }
   0x4   :  { %s1800_s14 = smov 0   ;;  %s1802_s15 = smov 0  }
   0x5   :  { %s1804_s16 = smov 0   ;;  %s1806_s17 = smov 0  }
   0x6 LB: > { %s1827_s18 = sadd.s32 4294967295, %s1765_s17   ;;  %s1372_s19 = sadd.s32 4294967294, %s1765_s17   ;;  %s1765_s17 = sphi %s1806_s17, %s18_s17   ;;  %s1761_s16 = sphi %s1804_s16, %s2354_s16   ;;  %s1757_s15 = sphi %s1802_s15, %s2353_s15   ;;  %s1753_s14 = sphi %s1800_s14, %s2352_s14   ;;  %s1749_s13 = sphi %s1798_s13, %s2351_s13   ;;  %s1745_s12 = sphi %s1796_s12, %s2350_s12  }
   0x7   : > { %p88_p0 = scmp.ne.s32.totalorder %s1753_s14, %s1749_s13  ;;  %p89_p1 = scmp.eq.s32.totalorder %s1765_s17, 0 }
   0x8   : > { %p94_p2 = scmp.ne.s32.totalorder %s1749_s13, %s1745_s12  ;;  %p2330_p3 = scmp.eq.s32.totalorder %s1827_s18, 0 }
   0x9   : > { %p1836_p4 = por %p89_p1, %p88_p0  ;;  %p120_p5 = scmp.eq.s32.totalorder %s1827_s18, 1 }
   0xa   : > { %p1843_p6 = por %p2330_p3, %p94_p2  ;;  %p126_p7 = scmp.eq.s32.totalorder %s1372_s19, 1 }
   0xb   : > { %p1847_p8 = por %p120_p5, %p88_p0  ;;  %p1373_p9 = scmp.ge.s32.totalorder %s1765_s17, 1 }
   0xc   : > { %s2335_s21 = scalar_select %p1843_p6, 1, 0 }
   0xd   : > { %s2336_s22 = scalar_select %p1847_p8, 1, 0 }
   0xe   : > { %p1852_p10 = por %p126_p7, %p94_p2  ;;  %p133_p11 = scmp.lt.s32.totalorder %s1765_s17, 3 }
   0xf   : > { %s1767_s25 = smov [#allocation2]   ;;  %p1498_p1 = scmp.lt.s32.totalorder %s1765_s17, 2 }
  0x10   : > { %s2337_s23 = scalar_select %p1852_p10, 1, 0 }
  0x11   : > { %p1857_p12 = pnand %p1373_p9, %p133_p11  ;;  %s145_s26 = sshll.u32 %s1767_s25, 4  ;;  %s1861_s26 = int_to_ptr.vmem [resolvable:$true] %s145_s26 }
  0x12   : > { %p1875_p2 = pnand %p1498_p1, %p1836_p4  ;;  %s1768_s29 = smov [#allocation5]  }
  0x13   : > { %p1481_p13 = pneg %p1857_p12  ;;  %s158_s30 = sshll.u32 %s1768_s29, 4  ;;  %s1879_s30 = int_to_ptr.vmem [resolvable:$true] %s158_s30 }
  0x14   : > { %s1589_s6 = scalar_lea.hbm %s2326_s0, 256 }
  0x15   : > { %p1869_p5 = pnand %p1481_p13, %p2330_p3  ;;  %p1590_p7 = scmp.ne.s32.totalorder %s2326_s0, %s1589_s6 }
  0x16   : > { %p1596_p13 = scmp.lt.u32.totalorder %s1589_s6, %s2326_s0 }
  0x17   : > { %p1591_p9 = pneg %p1869_p5 }
  0x19   : > { %p1592_p4 = pnand %p1591_p9, %p1590_p7 }
  0x1b   : > { %p1593_p11 = pneg %p1592_p4 }
  0x1d   : > { %p1598_p1 = pnand %p1596_p13, %p1593_p11 }
  0x1f   : > { %1601 = shalt.err (!%p1598_p1)
}
  0x20   : > { %s1602_s11 = scalar_lea.vmem %s1861_s26, 256  ;;  %p1610_p8 = scmp.lt.s32.totalorder %s1861_s26, %s1861_s26 }
  0x21   : > { %p1603_p0 = scmp.ne.s32.totalorder %s1861_s26, %s1602_s11  ;;  %p1611_p7 = scmp.lt.s32.totalorder %s1602_s11, %s1602_s11 }
  0x23   : > { %p1605_p3 = pnand %p1603_p0, %p1591_p9  ;;  %p1612_p4 = por %p1611_p7, %p1610_p8 }
  0x25   : > { %p1606_p10 = pneg %p1605_p3 }
  0x27   : > { %p1613_p6 = pnand %p1612_p4, %p1606_p10 }
  0x29   : > { %1616 = shalt.err (!%p1613_p6)
}
  0x2a   : > { %s2333_s19 = smov 128   ;;  %s1770_s20 = smov 8  }
  0x2b   : > { %1484 = dma.hbm_to_vmem [thread:$0]  (!%p1869_p5), %s2326_s0, 256, %s1861_s26, [#allocation3], %s2333_s19, %s2333_s19, %s1770_s20  }
  0x2c   : > { %s1617_s6 = scalar_lea.hbm %s2327_s1, 256 }
  0x2d   : > { %p1618_p3 = scmp.ne.s32.totalorder %s2327_s1, %s1617_s6  ;;  %p1624_p10 = scmp.lt.u32.totalorder %s1617_s6, %s2327_s1 }
  0x2f   : > { %p1620_p6 = pnand %p1618_p3, %p1591_p9 }
  0x31   : > { %p1621_p8 = pneg %p1620_p6 }
  0x33   : > { %p1626_p0 = pnand %p1624_p10, %p1621_p8 }
  0x35   : > { %1629 = shalt.err (!%p1626_p0)
}
  0x36   : > { %s1630_s26 = scalar_lea.vmem %s1879_s30, 256  ;;  %p1638_p7 = scmp.lt.s32.totalorder %s1879_s30, %s1879_s30 }
  0x37   : > { %p1631_p11 = scmp.ne.s32.totalorder %s1879_s30, %s1630_s26  ;;  %p1639_p4 = scmp.lt.s32.totalorder %s1630_s26, %s1630_s26 }
  0x39   : > { %p1633_p13 = pnand %p1631_p11, %p1591_p9  ;;  %p1640_p3 = por %p1639_p4, %p1638_p7 }
  0x3b   : > { %p1634_p1 = pneg %p1633_p13 }
  0x3d   : > { %p1641_p6 = pnand %p1640_p3, %p1634_p1 }
  0x3f   : > { %1644 = shalt.err (!%p1641_p6)
}
  0x40   : > { %1487 = dma.hbm_to_vmem [thread:$0]  (!%p1869_p5), %s2327_s1, 256, %s1879_s30, [#allocation6], %s2333_s19, %s2333_s19, %s1770_s20  }
  0x41   : > { %s81_s29 = sadd.s32 1, %s1753_s14  ;;  %s30_s4 = sadd.s32 1, %s1761_s16 }
  0x42   : > { %s172_s5 = sand.u32 1, %s1765_s17   ;;  %p32_p9 = scmp.ge.s32.totalorder %s30_s4, 2 }
  0x43   : > { %s174_s27 = sand.u32 1, %s1753_s14   ;;  %s1405_s6 = sshll.u32 %s1761_s16, 10 }
  0x44   : > { %s2356_s4 = smov (%p32_p9, %s30_s4), 0  ;;  %s1377_s7 = sshll.u32 %s174_s27, 6 }
  0x45   : > { %s1949_s10 = scalar_lea.hbm %s2328_s2, %s1405_s6  ;;  %s76_s30 = ssub.s32 %s1761_s16, %s2356_s4 }
  0x46   : > { %p79_p5 = scmp.eq.s32.totalorder %s76_s30, 0  ;;  %s176_s26 = scalar_lea.vmem [#allocation7], %s1377_s7 }
  0x47   : > { %s185_s11 = sshll.u32 %s176_s26, 4  ;;  %s1958_s19 = scalar_lea.sflag [#allocation3], %s172_s5  ;;  %s1953_s11 = int_to_ptr.vmem [resolvable:$true] %s185_s11 }
  0x48   : > { %s1956_s25 = scalar_select %p79_p5, %s1753_s14, %s81_s29  }
  0x49   : > { %s1645_s27 = scalar_lea.hbm %s1949_s10, 1024  ;;  %p1647_p10 = pneg %p1875_p2 }
  0x4a   : > { %p1646_p8 = scmp.ne.s32.totalorder %s1949_s10, %s1645_s27  ;;  %s1650_s9 = scalar_lea.hbm %s2328_s2, 2048 }
  0x4b   : > { %p1651_p13 = scmp.lt.u32.totalorder %s1949_s10, %s2328_s2  ;;  %p1652_p1 = scmp.lt.u32.totalorder %s1650_s9, %s1645_s27 }
  0x4c   : > { %p1648_p0 = pnand %p1647_p10, %p1646_p8  ;;  %p1654_p4 = scmp.lt.u32.totalorder %s1645_s27, %s1949_s10 }
  0x4d   : > { %p1653_p7 = por %p1652_p1, %p1651_p13 }
  0x4e   : > { %p1649_p11 = pneg %p1648_p0 }
  0x4f   : > { %p1655_p3 = por %p1654_p4, %p1653_p7 }
  0x51   : > { %p1656_p6 = pnand %p1655_p3, %p1649_p11 }
  0x53   : > { %1659 = shalt.err (!%p1656_p6)
}
  0x54   : > { %s1660_s29 = scalar_lea.vmem %s1953_s11, 1024  ;;  %s1771_s5 = smov [#allocation7]  }
  0x55   : > { %p1661_p9 = scmp.ne.s32.totalorder %s1953_s11, %s1660_s29  ;;  %s1665_s26 = sshll.u32 %s1771_s5, 4  ;;  %s1666_s26 = int_to_ptr.vmem [resolvable:$false] %s1665_s26 }
  0x56   : > { %s1667_s6 = scalar_lea.vmem %s1666_s26, 2048  ;;  %p1668_p0 = scmp.lt.s32.totalorder %s1953_s11, %s1666_s26 }
  0x57   : > { %p1663_p5 = pnand %p1661_p9, %p1647_p10  ;;  %p1669_p13 = scmp.lt.s32.totalorder %s1667_s6, %s1660_s29 }
  0x59   : > { %p1664_p8 = pneg %p1663_p5  ;;  %p1670_p1 = por %p1669_p13, %p1668_p0 }
  0x5b   : > { %p1671_p7 = pnand %p1670_p1, %p1664_p8 }
  0x5d   : > { %1674 = shalt.err (!%p1671_p7)
}
  0x5e   : > { %s2341_s27 = smov 128   ;;  %197 = sbr.rel (%p1857_p12) target bundleno = 408 (0x198), region = 32 }
  0x5f   : > { %1491 = dma.hbm_to_vmem [thread:$0]  (!%p1875_p2), %s1949_s10, 1024, %s1953_s11, %s1958_s19, %s2341_s27, %s2341_s27, %s1770_s20  }
  0x60   : > { %p2342_p10 = scmp.eq.s32.totalorder (!%p1857_p12), %s1827_s18, 0 }
  0x65   : > { %1728 = dma.done.wait (%p2342_p10), [#allocation3], 256   ;;  %p2343_p11 = pmov %p2342_p10 }
  0x66   : > { %p2344_p4 = pmov %p2342_p10 }
  0x67   : > { %1730 = vsyncadd (%p2343_p11), [#allocation3], 4294967040 }
  0x68   : > { %1732 = dma.done.wait (%p2344_p4), [#allocation6], 256   ;;  %p2345_p3 = pmov %p2344_p4 }
  0x69   : > { %s207_s28 = sand.u32 1, %s1827_s18   ;;  %s2001_s19 = sand.u32 1, %s1749_s13  }
  0x6a   : > { %1734 = vsyncadd (%p2345_p3), [#allocation6], 4294967040  ;;  %s1383_s24 = sshll.u32 %s2001_s19, 6  ;;  %s208_s20 = scalar_lea.sflag [#allocation3], %s207_s28 }
  0x6b   : > { %s2004_s10 = scalar_lea.vmem [#allocation7], %s1383_s24  ;;  %p2346_p12 = scmp.ne.s32.totalorder %s2335_s21, 0 }
  0x6d   : > { %1736 = dma.done.wait (%p2346_p12), %s208_s20, 1024  }
  0x6e   : > { %1738 = vsyncadd (%p2346_p12), %s208_s20, 4294966272  ;;  %vm251_vm0 = vcmask 130048   ;;  %v236_v0 = vld [vmem:[#allocation2] sm:$0xff]  ;;  %v237_v1 = vld [vmem:[#allocation2 + $0x8] sm:$0xff]  ;;  %v576_v14 = vlaneseq  ;;  %v1772_v15 = vmov 1966171168  }
  0x6f   : > { %v1387_v2 = vld [vmem:[%s2004_s10 + $0x20] sm:$0xff]  ;;  %v1451_v3 = vpack.c.bf16 %v237_v1, %v236_v0  ;;  %v249_v4 = vld [vmem:[#allocation5] sm:$0xff]  ;;  %v250_v5 = vld [vmem:[#allocation5 + $0x8] sm:$0xff]  ;;  %v585_v16 = vunpack.c.l.s4 %v1772_v15  ;;  %s1384_s18 = sshll.u32 %s2001_s19, 7  ;;  %s1406_s11 = sshll.u32 %s1757_s15, 11 }
  0x70   : > { %1434 = vmatprep.mubr.msk.f32.mxu1 %vm251_vm0, %v1387_v2  ;;  %v1463_v6 = vpack.c.bf16 %v250_v5, %v249_v4  ;;  %v1385_v7 = vld [vmem:[%s2004_s10 + $0x10] sm:$0xff]  ;;  %v1388_v8 = vld [vmem:[%s2004_s10 + $0x28] sm:$0xff]  ;;  %v1386_v9 = vld [vmem:[%s2004_s10 + $0x18] sm:$0xff]  ;;  %v577_v17 = vshrl.u32 %v576_v14, 7  ;;  %s2230_s21 = scalar_lea.vmem [#allocation8], %s1384_s18  ;;  %s2268_s7 = scalar_lea.hbm %s2329_s3, %s1406_s11 }
  0x71   : > { %1456 = vmatprep.subr.bf16.mxu1 %v1451_v3  ;;  %1452 = vmatprep.subr.bf16.mxu0 %v1451_v3  ;;  %v238_v10 = vld [vmem:[%s2004_s10] sm:$0xff]  ;;  %v1389_v11 = vld [vmem:[%s2004_s10 + $0x30] sm:$0xff]  ;;  %v1390_v12 = vld [vmem:[%s2004_s10 + $0x38] sm:$0xff]  ;;  %v586_v18 = vunpack.c.0.s8 %v585_v16  ;;  %s1265_s8 = sshll.u32 %s2230_s21, 4  ;;  %s1250_s30 = scalar_lea.sflag [#allocation4], %s2001_s19  ;;  %s2270_s8 = int_to_ptr.vmem [resolvable:$true] %s1265_s8 }
  0x72   : > { %1458 = vmatpush3.bf16.msra.mxu1 %v1451_v3  ;;  %1454 = vmatpush3.bf16.msra.mxu0 %v1451_v3  ;;  %v239_v13 = vld [vmem:[%s2004_s10 + $0x8] sm:$0xff]  ;;  %v578_v19 = vcvt.s32.f32 %v577_v17  ;;  %v2029_v26 = vsub.s32 0, %v577_v17  ;;  %s1675_s29 = scalar_lea.vmem %s2270_s8, 2048  ;;  %p2347_p6 = scmp.ne.s32.totalorder %s2336_s22, 0 }
  0x73   : > { %1464 = vmatprep.subr.bf16.mxu1 %v1463_v6  ;;  %1427 = vmatprep.mubr.msk.f32.mxu0 %vm251_vm0, %v1385_v7  ;;  %v2026_v20 = vsub.s32 %v586_v18, %v577_v17  ;;  %p1676_p2 = scmp.ne.s32.totalorder %s2270_s8, %s1675_s29  ;;  %s1773_s5 = smov [#allocation8]  }
  0x74   : > { %1460 = vmatprep.subr.bf16.mxu0 %v1451_v3  ;;  %v1399_v22 = vadd.f32 -3.5, %v578_v19  ;;  %s1679_s26 = sshll.u32 %s1773_s5, 4  ;;  %s1680_s26 = int_to_ptr.vmem [resolvable:$false] %s1679_s26 }
  0x75   : > { %1435 = vmatmul.mubr.msk.f32.vlgmr.msra.gmra.mrb[0].mxu1 %vm251_vm0, %v1388_v8  ;;  %1428 = vmatmul.mubr.msk.f32.vlgmr.msra.gmra.mrb[0].mxu0 %vm251_vm0, %v1386_v9  ;;  %p1677_p9 = pnand %p1676_p2, %p2347_p6  ;;  %s1681_s6 = scalar_lea.vmem %s1680_s26, 4096 }
  0x76   : > { %1466 = vmatpush3.bf16.msra.mxu1 %v1463_v6  ;;  %1448 = vmatprep.mubr.msk.f32.mxu1 %vm251_vm0, %v238_v10  ;;  %v580_v32 = vmul.f32 0.125, %v1399_v22  ;;  %p1682_p8 = scmp.lt.s32.totalorder %s2270_s8, %s1680_s26  ;;  %p1683_p0 = scmp.lt.s32.totalorder %s1681_s6, %s1675_s29 }
  0x77   : > { %1462 = vmatpush3.bf16.msra.mxu0 %v1451_v3  ;;  %1441 = vmatprep.mubr.msk.f32.mxu0 %vm251_vm0, %v1389_v11  ;;  %p1678_p5 = pneg %p1677_p9 }
  0x78   : > { %p1684_p13 = por %p1683_p0, %p1682_p8 }
  0x7a   : > { %1442 = vmatmul.mubr.msk.f32.vlgmr.msra.gmra.mrb[2].mxu0 %vm251_vm0, %v1390_v12  ;;  %p1685_p1 = pnand %p1684_p13, %p1678_p5 }
  0x7d   : > { %1449 = vmatmul.mubr.msk.f32.vlgmr.msra.gmra.mrb[0].mxu1 %vm251_vm0, %v239_v13 }
 0x148   : > { %v1429_v21 = vpop.f32.mrb[0].mxu0 }
 0x149   : > { %v732_v23 = vcombine.high %v1429_v21, %v1429_v21  ;;  %v739_v24 = vrot.slane %v1429_v21, %v2026_v20  ;;  %v324_v25 = vpop.f32.mrb[1].mxu0 }
 0x14a   : > { %v683_v27 = vcombine.high %v324_v25, %v324_v25  ;;  %v690_v28 = vrot.slane %v324_v25, %v2026_v20 }
 0x14b   : > { %v746_v29 = vrot.slane %v732_v23, %v2026_v20  ;;  %v747_v30 = vcombine.high %v739_v24, %v739_v24  ;;  %v755_v31 = vrot.slane %v739_v24, %v2026_v20 }
 0x14c   : > { %v697_v33 = vrot.slane %v683_v27, %v2026_v20  ;;  %v698_v34 = vcombine.high %v690_v28, %v690_v28  ;;  %v706_v42 = vrot.slane %v690_v28, %v2026_v20 }
 0x14d   : > { %v748_v35 = vcombine.high %v746_v29, %v746_v29  ;;  %v762_v36 = vrot.slane %v746_v29, %v2026_v20  ;;  %v769_v37 = vrot.slane %v747_v30, %v2026_v20  ;;  %v777_v38 = vcombine.high %v755_v31, %v755_v31  ;;  %v2037_v39 = vpop.f32.mrb[2].mxu0 }
 0x14e   : > { %v816_v40 = vrot.slane %v755_v31, %v2029_v26  ;;  %v699_v41 = vcombine.high %v697_v33, %v697_v33  ;;  %v713_v43 = vrot.slane %v697_v33, %v2026_v20  ;;  %v2042_v44 = vpop.f32.mrb[3].mxu0  ;;  %v720_v51 = vrot.slane %v698_v34, %v2026_v20 }
 0x14f   : > { %v776_v45 = vrot.slane %v748_v35, %v2026_v20  ;;  %v778_v46 = vcombine.high %v762_v36, %v762_v36  ;;  %v779_v47 = vcombine.high %v769_v37, %v769_v37  ;;  %v820_v48 = vrot.slane %v769_v37, %v2029_v26 }
 0x150   : > { %v824_v49 = vrot.slane %v777_v38, %v2029_v26  ;;  %v832_v50 = vrot.slane %v762_v36, %v2029_v26  ;;  %v727_v52 = vrot.slane %v699_v41, %v2026_v20  ;;  %v1450_v53 = vpop.f32.mrb[0].mxu1  ;;  %v869_v59 = vmul.f32 %v816_v40, %v580_v32 }
 0x151   : > { %v780_v54 = vcombine.high %v776_v45, %v776_v45  ;;  %v828_v55 = vrot.slane %v779_v47, %v2029_v26  ;;  %v836_v56 = vrot.slane %v776_v45, %v2029_v26  ;;  %v840_v57 = vrot.slane %v778_v46, %v2029_v26  ;;  %v567_v58 = vpop.f32.mrb[1].mxu1 }
 0x152   : > { %v2053_v60 = vmul.f32 %v820_v48, %v580_v32  ;;  %v2055_v61 = vmul.f32 %v824_v49, %v580_v32  ;;  %v728_v62 = vcombine.high %v706_v42, %v706_v42  ;;  %v873_v1 = vmul.f32 %v832_v50, %v580_v32 }
 0x153   : > { %v844_v63 = vrot.slane %v780_v54, %v2029_v26  ;;  %v2058_v0 = vmul.f32 %v828_v55, %v580_v32  ;;  %v2060_v2 = vmul.f32 %v836_v56, %v580_v32  ;;  %v729_v3 = vcombine.high %v713_v43, %v713_v43 }
 0x154   : > { %v730_v4 = vcombine.high %v720_v51, %v720_v51  ;;  %v731_v5 = vcombine.high %v727_v52, %v727_v52  ;;  %v784_v6 = vrot.slane %v706_v42, %v2029_v26  ;;  %v875_v7 = vmul.f32 %v840_v57, %v580_v32 }
 0x155   : > { %v788_v8 = vrot.slane %v720_v51, %v2029_v26  ;;  %v792_v9 = vrot.slane %v728_v62, %v2029_v26  ;;  %v800_v10 = vrot.slane %v713_v43, %v2029_v26  ;;  %v804_v12 = vrot.slane %v727_v52, %v2029_v26 }
 0x156   : > { %v796_v11 = vrot.slane %v730_v4, %v2029_v26  ;;  %v808_v13 = vrot.slane %v729_v3, %v2029_v26  ;;  %v812_v14 = vrot.slane %v731_v5, %v2029_v26  ;;  %v876_v15 = vmul.f32 %v844_v63, %v580_v32 }
 0x157   : > { %v2070_v16 = vmul.f32 %v784_v6, %v580_v32  ;;  %v2072_v17 = vmul.f32 %v788_v8, %v580_v32  ;;  %v2074_v18 = vmul.f32 %v792_v9, %v580_v32  ;;  %v2078_v21 = vmul.f32 %v800_v10, %v580_v32 }
 0x158   : > { %v2076_v19 = vmul.f32 %v796_v11, %v580_v32  ;;  %v2080_v22 = vmul.f32 %v804_v12, %v580_v32  ;;  %v2082_v23 = vmul.f32 %v808_v13, %v580_v32  ;;  %v632_v24 = vcombine.high %v1450_v53, %v1450_v53 }
 0x159   : > { %v639_v25 = vrot.slane %v1450_v53, %v2026_v20  ;;  %v583_v27 = vcombine.high %v567_v58, %v567_v58  ;;  %v590_v28 = vrot.slane %v567_v58, %v2026_v20  ;;  %v2086_v29 = vmul.f32 %v812_v14, %v580_v32 }
 0x15a   : > { %v1088_v30 = vcombine.high %v2037_v39, %v2037_v39  ;;  %v2092_v31 = vrot.slane %v2037_v39, %v2026_v20  ;;  %v1039_v33 = vcombine.high %v2042_v44, %v2042_v44  ;;  %v646_v34 = vrot.slane %v632_v24, %v2026_v20 }
 0x15b   : > { %v647_v35 = vcombine.high %v639_v25, %v639_v25  ;;  %v655_v36 = vrot.slane %v639_v25, %v2026_v20  ;;  %v597_v37 = vrot.slane %v583_v27, %v2026_v20  ;;  %v598_v38 = vcombine.high %v590_v28, %v590_v28 }
 0x15c   : > { %v606_v32 = vrot.slane %v590_v28, %v2026_v20  ;;  %v2101_v40 = vrot.slane %v1088_v30, %v2026_v20  ;;  %v1103_v39 = vcombine.high %v2092_v31, %v2092_v31  ;;  %v648_v41 = vcombine.high %v646_v34, %v646_v34 }
 0x15d   : > { %v662_v42 = vrot.slane %v646_v34, %v2026_v20  ;;  %v669_v43 = vrot.slane %v647_v35, %v2026_v20  ;;  %v677_v45 = vcombine.high %v655_v36, %v655_v36  ;;  %v912_v46 = vrot.slane %v655_v36, %v2029_v26 }
 0x15e   : > { %v599_v47 = vcombine.high %v597_v37, %v597_v37  ;;  %v613_v48 = vrot.slane %v597_v37, %v2026_v20  ;;  %v620_v49 = vrot.slane %v598_v38, %v2026_v20  ;;  %v676_v50 = vrot.slane %v648_v41, %v2026_v20 }
 0x15f   : > { %v678_v51 = vcombine.high %v662_v42, %v662_v42  ;;  %v679_v52 = vcombine.high %v669_v43, %v669_v43  ;;  %v916_v53 = vrot.slane %v669_v43, %v2029_v26  ;;  %v920_v54 = vrot.slane %v677_v45, %v2029_v26 }
 0x160   : > { %v928_v55 = vrot.slane %v662_v42, %v2029_v26  ;;  %v965_v56 = vadd.f32 %v912_v46, %v869_v59  ;;  %v627_v57 = vrot.slane %v599_v47, %v2026_v20  ;;  %v680_v58 = vcombine.high %v676_v50, %v676_v50 }
 0x161   : > { %v924_v62 = vrot.slane %v679_v52, %v2029_v26  ;;  %v932_v63 = vrot.slane %v676_v50, %v2029_v26  ;;  %v936_v3 = vrot.slane %v678_v51, %v2029_v26  ;;  %v966_v4 = vadd.f32 %v916_v53, %v2053_v60 }
 0x162   : > { %v967_v5 = vadd.f32 %v920_v54, %v2055_v61  ;;  %v2120_v6 = vadd.f32 %v928_v55, %v873_v1  ;;  %1557 = vrcp.f32 %v965_v56  ;;  %v940_v8 = vrot.slane %v680_v58, %v2029_v26 }
 0x163   : > { %v968_v59 = vadd.f32 %v924_v62, %v2058_v0  ;;  %v2125_v9 = vadd.f32 %v932_v63, %v2060_v2  ;;  %v2127_v10 = vadd.f32 %v936_v3, %v875_v7  ;;  %1559 = vrcp.f32 %v966_v4 }
 0x164   : > { %v628_v11 = vcombine.high %v606_v32, %v606_v32  ;;  %v629_v12 = vcombine.high %v613_v48, %v613_v48  ;;  %v630_v13 = vcombine.high %v620_v49, %v620_v49  ;;  %v2129_v14 = vadd.f32 %v940_v8, %v876_v15 }
 0x165   : > { %1561 = vrcp.f32 %v967_v5  ;;  %v631_v60 = vcombine.high %v627_v57, %v627_v57  ;;  %v880_v61 = vrot.slane %v606_v32, %v2029_v26  ;;  %v884_v1 = vrot.slane %v620_v49, %v2029_v26 }
 0x166   : > { %1563 = vrcp.f32 %v968_v59  ;;  %v888_v0 = vrot.slane %v628_v11, %v2029_v26  ;;  %v892_v2 = vrot.slane %v630_v13, %v2029_v26  ;;  %v896_v7 = vrot.slane %v613_v48, %v2029_v26 }
 0x167   : > { %1565 = vrcp.f32 %v2120_v6  ;;  %v900_v24 = vrot.slane %v627_v57, %v2029_v26  ;;  %v904_v15 = vrot.slane %v629_v12, %v2029_v26  ;;  %v908_v25 = vrot.slane %v631_v60, %v2029_v26 }
 0x168   : > { %1567 = vrcp.f32 %v2125_v9  ;;  %v2142_v27 = vadd.f32 %v880_v61, %v2070_v16  ;;  %v2145_v28 = vadd.f32 %v884_v1, %v2072_v17  ;;  %v2149_v30 = vadd.f32 %v888_v0, %v2074_v18 }
 0x169   : > { %1569 = vrcp.f32 %v2127_v10  ;;  %v2152_v34 = vadd.f32 %v892_v2, %v2076_v19  ;;  %v2155_v35 = vadd.f32 %v896_v7, %v2078_v21  ;;  %v2159_v36 = vadd.f32 %v900_v24, %v2080_v22 }
 0x16a   : > { %1571 = vrcp.f32 %v2129_v14  ;;  %v2162_v16 = vadd.f32 %v904_v15, %v2082_v23  ;;  %v2165_v17 = vadd.f32 %v908_v25, %v2086_v29  ;;  %v1104_v18 = vcombine.high %v2101_v40, %v2101_v40 }
 0x16b   : > { %1573 = vrcp.f32 %v2142_v27  ;;  %v1111_v19 = vrot.slane %v2092_v31, %v2026_v20  ;;  %v2174_v21 = vrot.slane %v2101_v40, %v2026_v20  ;;  %v2181_v23 = vrot.slane %v1103_v39, %v2026_v20 }
 0x16c   : > { %v1558_v22 = vpop.eup %1557  ;;  %1575 = vrcp.f32 %v2145_v28  ;;  %v2185_v29 = vrot.slane %v2042_v44, %v2026_v20  ;;  %v2191_v37 = vrot.slane %v1039_v33, %v2026_v20  ;;  %v2195_v32 = vrot.slane %v1104_v18, %v2026_v20 }
 0x16d   : > { %v997_v38 = vmul.f32 %v1558_v22, %v965_v56  ;;  %1577 = vrcp.f32 %v2149_v30  ;;  %v1133_v40 = vcombine.high %v1111_v19, %v1111_v19  ;;  %v1560_v31 = vpop.eup %1559  ;;  %v1134_v39 = vcombine.high %v2174_v21, %v2174_v21 }
 0x16e   : > { %1579 = vrcp.f32 %v2152_v34  ;;  %v1135_v41 = vcombine.high %v2181_v23, %v2181_v23  ;;  %v1172_v44 = vrot.slane %v1111_v19, %v2029_v26  ;;  %v998_v42 = vmul.f32 %v1560_v31, %v966_v4 }
 0x16f   : > { %v1562_v33 = vpop.eup %1561  ;;  %v1013_v43 = vsub.f32 2.0, %v997_v38  ;;  %1581 = vrcp.f32 %v2155_v35  ;;  %v1136_v45 = vcombine.high %v2195_v32, %v2195_v32  ;;  %v1176_v48 = vrot.slane %v2181_v23, %v2029_v26 }
 0x170   : > { %v1564_v46 = vpop.eup %1563  ;;  %v999_v47 = vmul.f32 %v1562_v33, %v967_v5  ;;  %1583 = vrcp.f32 %v2159_v36  ;;  %v1180_v49 = vrot.slane %v1133_v40, %v2029_v26  ;;  %v1014_v52 = vsub.f32 2.0, %v998_v42 }
 0x171   : > { %v1566_v50 = vpop.eup %1565  ;;  %v1000_v51 = vmul.f32 %v1564_v46, %v968_v59  ;;  %1585 = vrcp.f32 %v2162_v16  ;;  %v1029_v53 = vmul.f32 %v1558_v22, %v1013_v43  ;;  %v1184_v57 = vrot.slane %v1135_v41, %v2029_v26 }
 0x172   : > { %v1568_v54 = vpop.eup %1567  ;;  %v1001_v55 = vmul.f32 %v1566_v50, %v2120_v6  ;;  %v1015_v56 = vsub.f32 2.0, %v999_v47  ;;  %1587 = vrcp.f32 %v2165_v17  ;;  %v1030_v3 = vmul.f32 %v1560_v31, %v1014_v52 }
 0x173   : > { %v1570_v58 = vpop.eup %1569  ;;  %v1002_v62 = vmul.f32 %v1568_v54, %v2125_v9  ;;  %v1016_v63 = vsub.f32 2.0, %v1000_v51  ;;  %v1188_v4 = vrot.slane %v2174_v21, %v2029_v26  ;;  %v1192_v6 = vrot.slane %v2195_v32, %v2029_v26 }
 0x174   : > { %v1572_v5 = vpop.eup %1571  ;;  %v1003_v8 = vmul.f32 %v1570_v58, %v2127_v10  ;;  %v1017_v59 = vsub.f32 2.0, %v1001_v55  ;;  %v1031_v11 = vmul.f32 %v1562_v33, %v1015_v56  ;;  %v1196_v9 = vrot.slane %v1134_v39, %v2029_v26 }
 0x175   : > { %v1574_v12 = vpop.eup %1573  ;;  %v1004_v13 = vmul.f32 %v1572_v5, %v2129_v14  ;;  %v1018_v60 = vsub.f32 2.0, %v1002_v62  ;;  %v1032_v61 = vmul.f32 %v1564_v46, %v1016_v63  ;;  %v1200_v24 = vrot.slane %v1136_v45, %v2029_v26 }
 0x176   : > { %v1576_v1 = vpop.eup %1575  ;;  %v1019_v0 = vsub.f32 2.0, %v1003_v8  ;;  %v989_v2 = vmul.f32 %v1574_v12, %v2142_v27  ;;  %v1033_v7 = vmul.f32 %v1566_v50, %v1017_v59  ;;  %v1225_v19 = vmul.f32 %v1172_v44, %v1029_v53 }
 0x177   : > { %v1578_v10 = vpop.eup %1577  ;;  %v1020_v15 = vsub.f32 2.0, %v1004_v13  ;;  %v990_v25 = vmul.f32 %v1576_v1, %v2145_v28  ;;  %v1034_v18 = vmul.f32 %v1568_v54, %v1018_v60  ;;  %v1226_v38 = vmul.f32 %v1176_v48, %v1030_v3 }
 0x178   : > { %v1580_v21 = vpop.eup %1579  ;;  %v991_v14 = vmul.f32 %v1578_v10, %v2149_v30  ;;  %v1005_v22 = vsub.f32 2.0, %v989_v2  ;;  %v1035_v23 = vmul.f32 %v1570_v58, %v1019_v0  ;;  %v1227_v39 = vmul.f32 %v1180_v49, %v1031_v11  ;;  %1241 = vst [vmem:[%s2230_s21 + $0x40] sm:$0xff] %v1225_v19 }
 0x179   : > { %v1582_v32 = vpop.eup %1581  ;;  %v992_v40 = vmul.f32 %v1580_v21, %v2152_v34  ;;  %v1006_v27 = vsub.f32 2.0, %v990_v25  ;;  %v1036_v31 = vmul.f32 %v1572_v5, %v1020_v15  ;;  %v1228_v44 = vmul.f32 %v1184_v57, %v1032_v61  ;;  %1242 = vst [vmem:[%s2230_s21 + $0x48] sm:$0xff] %v1226_v38 }
 0x17a   : > { %v1584_v28 = vpop.eup %1583  ;;  %v993_v30 = vmul.f32 %v1582_v32, %v2155_v35  ;;  %v1007_v41 = vsub.f32 2.0, %v991_v14  ;;  %v1229_v33 = vmul.f32 %v1188_v4, %v1033_v7  ;;  %v1230_v45 = vmul.f32 %v1192_v6, %v1034_v18  ;;  %1243 = vst [vmem:[%s2230_s21 + $0x50] sm:$0xff] %v1227_v39 }
 0x17b   : > { %v1586_v34 = vpop.eup %1585  ;;  %v994_v42 = vmul.f32 %v1584_v28, %v2159_v36  ;;  %v1008_v43 = vsub.f32 2.0, %v992_v40  ;;  %v1231_v46 = vmul.f32 %v1196_v9, %v1035_v23  ;;  %v1232_v35 = vmul.f32 %v1200_v24, %v1036_v31  ;;  %1244 = vst [vmem:[%s2230_s21 + $0x58] sm:$0xff] %v1228_v44 }
 0x17c   : > { %v1588_v47 = vpop.eup %1587  ;;  %v995_v48 = vmul.f32 %v1586_v34, %v2162_v16  ;;  %v1009_v49 = vsub.f32 2.0, %v993_v30  ;;  %1245 = vst [vmem:[%s2230_s21 + $0x60] sm:$0xff] %v1229_v33  ;;  %v1054_v50 = vcombine.high %v2185_v29, %v2185_v29  ;;  %1246 = vst [vmem:[%s2230_s21 + $0x68] sm:$0xff] %v1230_v45  ;;  %v1021_v36 = vmul.f32 %v1574_v12, %v1005_v22 }
 0x17d   : > { %v996_v51 = vmul.f32 %v1588_v47, %v2165_v17  ;;  %v1010_v52 = vsub.f32 2.0, %v994_v42  ;;  %1247 = vst [vmem:[%s2230_s21 + $0x70] sm:$0xff] %v1231_v46  ;;  %v1022_v53 = vmul.f32 %v1576_v1, %v1006_v27  ;;  %1248 = vst [vmem:[%s2230_s21 + $0x78] sm:$0xff] %v1232_v35  ;;  %v1023_v55 = vmul.f32 %v1578_v10, %v1007_v41 }
 0x17e   : > { %v1011_v54 = vsub.f32 2.0, %v995_v48  ;;  %v1024_v56 = vmul.f32 %v1580_v21, %v1008_v43  ;;  %v1055_v16 = vcombine.high %v2191_v37, %v2191_v37  ;;  %v1025_v58 = vmul.f32 %v1582_v32, %v1009_v49 }
 0x17f   : > { %v1012_v57 = vsub.f32 2.0, %v996_v51  ;;  %v1062_v62 = vrot.slane %v2185_v29, %v2026_v20  ;;  %v1069_v17 = vrot.slane %v2191_v37, %v2026_v20  ;;  %v1026_v63 = vmul.f32 %v1584_v28, %v1010_v52 }
 0x180   : > { %v1027_v3 = vmul.f32 %v1586_v34, %v1011_v54  ;;  %v1076_v4 = vrot.slane %v1054_v50, %v2026_v20  ;;  %v1083_v5 = vrot.slane %v1055_v16, %v2026_v20 }
 0x181   : > { %v1028_v8 = vmul.f32 %v1588_v47, %v1012_v57  ;;  %v1084_v59 = vcombine.high %v1062_v62, %v1062_v62  ;;  %v1085_v11 = vcombine.high %v1069_v17, %v1069_v17  ;;  %v1140_v6 = vrot.slane %v1062_v62, %v2029_v26 }
 0x182   : > { %v1086_v12 = vcombine.high %v1076_v4, %v1076_v4  ;;  %v1087_v13 = vcombine.high %v1083_v5, %v1083_v5  ;;  %v1144_v60 = vrot.slane %v1076_v4, %v2029_v26  ;;  %v1156_v29 = vrot.slane %v1069_v17, %v2029_v26 }
 0x183   : > { %v1148_v37 = vrot.slane %v1084_v59, %v2029_v26  ;;  %v1160_v61 = vrot.slane %v1083_v5, %v2029_v26  ;;  %v1164_v20 = vrot.slane %v1085_v11, %v2029_v26  ;;  %v1217_v9 = vmul.f32 %v1140_v6, %v1021_v36 }
 0x184   : > { %v1152_v1 = vrot.slane %v1086_v12, %v2029_v26  ;;  %v1168_v0 = vrot.slane %v1087_v13, %v2029_v26  ;;  %v1218_v2 = vmul.f32 %v1144_v60, %v1022_v53  ;;  %v1221_v7 = vmul.f32 %v1156_v29, %v1025_v58 }
 0x185   : > { %v1219_v24 = vmul.f32 %v1148_v37, %v1023_v55  ;;  %v1222_v10 = vmul.f32 %v1160_v61, %v1026_v63  ;;  %v1223_v15 = vmul.f32 %v1164_v20, %v1027_v3  ;;  %1233 = vst [vmem:[%s2230_s21] sm:$0xff] %v1217_v9 }
 0x186   : > { %v1220_v26 = vmul.f32 %v1152_v1, %v1024_v56  ;;  %v1224_v25 = vmul.f32 %v1168_v0, %v1028_v8  ;;  %1234 = vst [vmem:[%s2230_s21 + $0x8] sm:$0xff] %v1218_v2  ;;  %1237 = vst [vmem:[%s2230_s21 + $0x20] sm:$0xff] %v1221_v7 }
 0x187   : > { %1235 = vst [vmem:[%s2230_s21 + $0x10] sm:$0xff] %v1219_v24  ;;  %1238 = vst [vmem:[%s2230_s21 + $0x28] sm:$0xff] %v1222_v10 }
 0x188   : > { %1239 = vst [vmem:[%s2230_s21 + $0x30] sm:$0xff] %v1223_v15  ;;  %1236 = vst [vmem:[%s2230_s21 + $0x18] sm:$0xff] %v1220_v26 }
 0x189   : > { %1240 = vst [vmem:[%s2230_s21 + $0x38] sm:$0xff] %v1224_v25 }
 0x18a   : > { %1688 = shalt.err (!%p1685_p1)
}
 0x18b   : > { %s1689_s27 = scalar_lea.hbm %s2268_s7, 2048  ;;  %s1693_s20 = scalar_lea.hbm %s2329_s3, 4096 }
 0x18c   : > { %p1690_p7 = scmp.ne.s32.totalorder %s2268_s7, %s1689_s27  ;;  %p1694_p4 = scmp.lt.u32.totalorder %s2268_s7, %s2329_s3 }
 0x18d   : > { %p1695_p3 = scmp.lt.u32.totalorder %s1693_s20, %s1689_s27  ;;  %p1697_p2 = scmp.lt.u32.totalorder %s1689_s27, %s2268_s7 }
 0x18e   : > { %p1691_p10 = pnand %p1690_p7, %p2347_p6 }
 0x18f   : > { %p1696_p12 = por %p1695_p3, %p1694_p4 }
 0x190   : > { %p1692_p11 = pneg %p1691_p10 }
 0x191   : > { %p1698_p9 = por %p1697_p2, %p1696_p12 }
 0x193   : > { %p1699_p5 = pnand %p1698_p9, %p1692_p11 }
 0x195   : > { %1702 = shalt.err (!%p1699_p5)
}
 0x196   : > { %s1774_s21 = smov 128   ;;  %s1775_s11 = smov 8  }
 0x197   : > { %1479 = dma.vmem_to_hbm [thread:$0]  (%p2347_p6), %s2270_s8, 2048, %s2268_s7, %s1250_s30, %s1774_s21, %s1774_s21, %s1775_s11  }
 0x198 PF: > { %s1280_s15 = sand.u32 1, %s1745_s12   ;;  %p2348_p8 = scmp.ne.s32.totalorder %s2337_s23, 0 }
 0x199   : > { %p2349_p0 = scmp.ge.s32.totalorder %s1765_s17, 2  ;;  %s1281_s9 = scalar_lea.sflag [#allocation4], %s1280_s15 }
 0x19b   : > { %p1493_p13 = pnand %p2349_p0, %p2348_p8 }
 0x19d   : > { %1740 = dma.done.wait (!%p1493_p13), %s1281_s9, 2048  }
 0x19e   : > { %1742 = vsyncadd (!%p1493_p13), %s1281_s9, 4294965248  ;;  %s18_s17 = sadd.s32 1, %s1765_s17   ;;  %s2350_s12 = smov %s1749_s13 }
 0x19f   : > { %p15_p1 = scmp.ge.s32.totalorder %s18_s17, 4   ;;  %s2351_s13 = smov %s1753_s14 }
 0x1a0   : > { %s2352_s14 = smov %s1956_s25  ;;  %s2353_s15 = smov %s1761_s16 }
 0x1a1   : > { %s2354_s16 = smov %s2356_s4  ;;  %17 = sbr.rel (!%p15_p1) target bundleno = 6 (0x6), region = 87 }
 0x1a8   :  { %1286 = vsyncpa [#allocation3], 1 }
 0x1a9   :  { %1288 = vsyncpa [#allocation3 + $0x1], 1 }
 0x1aa   :  { %1289 = vsyncpa [#allocation6], 1 }
 0x1ab   :  { %1290 = vsyncpa [#allocation4], 1 }
 0x1ac   :  { %1292 = vsyncpa [#allocation4 + $0x1], 1 }

</bundles_post_ra>
